<compile_context>
chip_gen: v5e
topology: v5e:2x2
jax: 0.10.0
libtpu: 0.0.40
codegen_flags: <defaults>
</compile_context>

<pallas_src>
import functools

import jax
import jax.numpy as jnp
from jax import lax
from jax.experimental import pallas as pl
from jax.experimental.pallas import tpu as pltpu


def _pos_attn_kernel(xq_ref, x_ref, m_ref, u_ref, wv_ref, bv_ref, gamma_ref,
                     o_ref, *, mm_dtype):
    # xq_ref block: (1, C, tq)   -- query positions for this grid step
    # x_ref  block: (1, C, N)    -- all positions (keys / values), resident per batch
    xq_f32 = xq_ref[0]                                    # (C, tq) f32 (residual path)
    x_f32 = x_ref[0]                                      # (C, N)  f32

    xq = xq_f32.astype(mm_dtype)
    x = x_f32.astype(mm_dtype)
    m_w = m_ref[...].astype(mm_dtype)                     # fused Wq @ Wk^T   (C, C)
    u = u_ref[...].astype(mm_dtype)                       # Wk @ bq           (1, C)
    wv = wv_ref[...].astype(mm_dtype)                     # value weights     (C, C)

    # y = (Wq Wk^T) @ x : (C, N), f32 accumulation.
    y = jnp.dot(m_w, x, preferred_element_type=jnp.float32)

    # logits[i, j] = sum_c xq[c, i] * y[c, j]  -> contract the channel axis of
    # both operands directly (no transpose materialized).
    logits = lax.dot_general(
        xq, y.astype(mm_dtype),
        dimension_numbers=(((0,), (0,)), ((), ())),
        preferred_element_type=jnp.float32)               # (tq, N)

    # Column bias (Wk bq)^T x_j; the per-row (query-side) bias terms are
    # constant along the softmax axis and therefore omitted.
    col_bias = jnp.dot(u, x, preferred_element_type=jnp.float32)   # (1, N)
    logits = logits + col_bias

    # Softmax over key positions, in f32 on the VPU/EUP.
    row_max = jnp.max(logits, axis=-1, keepdims=True)
    e = jnp.exp(logits - row_max)
    denom = jnp.sum(e, axis=-1, keepdims=True)
    attn = e * pl.reciprocal(denom, approx=True)          # (tq, N)

    # Value projection v = Wv^T @ x + bv : (C, N), f32 accumulation.
    v = lax.dot_general(
        wv, x, dimension_numbers=(((0,), (0,)), ((), ())),
        preferred_element_type=jnp.float32) + bv_ref[...]

    # out[c, i] = sum_j v[c, j] * attn[i, j]  (contract key axis of both).
    out = lax.dot_general(
        v.astype(mm_dtype), attn.astype(mm_dtype),
        dimension_numbers=(((1,), (1,)), ((), ())),
        preferred_element_type=jnp.float32)               # (C, tq)

    o_ref[0] = gamma_ref[0] * out + xq_f32


def position_attention(x_nchw, wq, bq, wk, bk, wv, bv, gamma, *,
                       use_bf16=False, tq=None):
    """PositionAttention forward.

    x_nchw: (B, C, H, W) f32.
    wq, wk: (C, C//8) 1x1-conv weights stored as (C_in, C_out); bq, bk: (C//8,)
    wv:     (C, C); bv: (C,)
    gamma:  (1,) learned residual scale.
    """
    B, C, H, W = x_nchw.shape
    N = H * W

    # NCHW -> (B, C, N): a pure reshape, no transpose; lane axis = N.
    x_bcn = x_nchw.reshape(B, C, N).astype(jnp.float32)

    if tq is None:
        tq = 128 if N % 128 == 0 else N
    assert N % tq == 0, "query tile must divide N"
    n_q = N // tq

    # Fused Q/K projection constants (tiny, computed once outside the kernel):
    #   logits = x^T (Wq Wk^T) x + (Wk bq)^T x_j   (+ row-constant terms dropped)
    m_fused = (wq @ wk.T).astype(jnp.float32)             # (C, C)
    u = (wk @ bq).reshape(1, C).astype(jnp.float32)       # (1, C)
    bv2 = bv.reshape(C, 1).astype(jnp.float32)            # (C, 1)
    gamma1 = gamma.reshape(1).astype(jnp.float32)         # (1,) -> SMEM

    mm_dtype = jnp.bfloat16 if use_bf16 else jnp.float32

    # Scoped-VMEM budget sized to the chosen tiles (double-buffered blocks +
    # in-kernel intermediates), clamped to stay under v7x's 64 MiB physical VMEM.
    f = 4
    est = ((2 * C * N + 4 * C * tq + 2 * C * C + 2 * C) * f          # blocks
           + (3 * tq * N + 2 * C * N + 2 * C * tq) * f               # intermediates
           + (4 << 20))                                              # slack
    vmem_limit = int(min(max(est, 16 << 20), 64 << 20))

    out_bcn = pl.pallas_call(
        functools.partial(_pos_attn_kernel, mm_dtype=mm_dtype),
        out_shape=jax.ShapeDtypeStruct((B, C, N), jnp.float32),
        grid_spec=pltpu.PrefetchScalarGridSpec(
            num_scalar_prefetch=0,
            grid=(B, n_q),
            in_specs=[
                pl.BlockSpec((1, C, tq), lambda b, q: (b, 0, q)),    # x query tile
                pl.BlockSpec((1, C, N),  lambda b, q: (b, 0, 0)),    # x full slab (K/V)
                pl.BlockSpec((C, C),     lambda b, q: (0, 0)),       # Wq @ Wk^T
                pl.BlockSpec((1, C),     lambda b, q: (0, 0)),       # Wk @ bq
                pl.BlockSpec((C, C),     lambda b, q: (0, 0)),       # Wv
                pl.BlockSpec((C, 1),     lambda b, q: (0, 0)),       # bv
                pl.BlockSpec(memory_space=pltpu.MemorySpace.SMEM),   # gamma scalar
            ],
            out_specs=pl.BlockSpec((1, C, tq), lambda b, q: (b, 0, q)),
        ),
        compiler_params=pltpu.CompilerParams(
            dimension_semantics=("parallel", "parallel"),
            vmem_limit_bytes=vmem_limit),
    )(x_bcn, x_bcn, m_fused, u, wv.astype(jnp.float32), bv2, gamma1)

    return out_bcn.reshape(B, C, H, W)


def _reference(x, wq, bq, wk, bk, wv, bv, gamma):
    """Pure-JAX reference reproducing the PyTorch forward semantics."""
    B, C, H, W = x.shape
    N = H * W
    xf = x.reshape(B, C, N)
    q = jnp.einsum('io,bin->bon', wq, xf) + bq[None, :, None]   # (B, C8, N)
    k = jnp.einsum('io,bin->bon', wk, xf) + bk[None, :, None]   # (B, C8, N)
    v = jnp.einsum('io,bin->bon', wv, xf) + bv[None, :, None]   # (B, C,  N)
    attn = jax.nn.softmax(jnp.einsum('bci,bcj->bij', q, k), axis=-1)  # (B, N, N)
    out = jnp.einsum('bcj,bij->bci', v, attn)                   # (B, C, N)
    return gamma.reshape(()) * out.reshape(B, C, H, W) + x


if __name__ == "__main__":
    key = jax.random.PRNGKey(0)
    B, C, H, W = 2, 32, 16, 16       # N = 256 -> two query tiles of 128
    C8 = C // 8

    ks = jax.random.split(key, 7)
    x = jax.random.normal(ks[0], (B, C, H, W), dtype=jnp.float32)

    # Conv2d(C, C_out, kernel_size=1) weights, stored transposed as (C_in, C_out)
    wq = jax.random.normal(ks[1], (C, C8), dtype=jnp.float32) * 0.1
    bq = jax.random.normal(ks[2], (C8,),   dtype=jnp.float32) * 0.1
    wk = jax.random.normal(ks[3], (C, C8), dtype=jnp.float32) * 0.1
    bk = jax.random.normal(ks[4], (C8,),   dtype=jnp.float32) * 0.1
    wv = jax.random.normal(ks[5], (C, C),  dtype=jnp.float32) * 0.1
    bv = jax.random.normal(ks[6], (C,),    dtype=jnp.float32) * 0.1
    # PyTorch initializes gamma to zeros; use a nonzero value so the attention
    # path is actually exercised by the correctness check.
    gamma = jnp.full((1,), 0.5, dtype=jnp.float32)

    ref = jax.block_until_ready(_reference(x, wq, bq, wk, bk, wv, bv, gamma))

    # f32 MXU path (v5e-friendly); tolerance accounts for the EUP approximate
    # reciprocal used in the softmax normalization.
    out_f32 = jax.block_until_ready(
        position_attention(x, wq, bq, wk, bk, wv, bv, gamma, use_bf16=False))
    assert out_f32.shape == (B, C, H, W)
    err32 = jnp.max(jnp.abs(out_f32 - ref))
    assert jnp.allclose(out_f32, ref, atol=5e-3, rtol=5e-3), \
        f"f32 path max abs err = {err32}"

    # bf16 MXU-input path (v6e/v7x); f32 accumulation + f32 softmax, so only
    # matmul rounding differs -> looser tolerance.
    out_bf16 = jax.block_until_ready(
        position_attention(x, wq, bq, wk, bk, wv, bv, gamma, use_bf16=True))
    errbf = jnp.max(jnp.abs(out_bf16 - ref))
    assert jnp.allclose(out_bf16, ref, atol=7e-2, rtol=7e-2), \
        f"bf16 path max abs err = {errbf}"

    print("KERNEL_OK")
</pallas_src>

<mosaic_0001>
module attributes {stable_mosaic.version = 11 : i64} {
  func.func @_pos_attn_kernel(%arg0: i32, %arg1: i32, %arg2: memref<1x32x128xf32, #tpu.memory_space<vmem>>, %arg3: memref<1x32x256xf32, #tpu.memory_space<vmem>>, %arg4: memref<32x32xf32, #tpu.memory_space<vmem>>, %arg5: memref<1x32xf32, #tpu.memory_space<vmem>>, %arg6: memref<32x32xf32, #tpu.memory_space<vmem>>, %arg7: memref<32x1xf32, #tpu.memory_space<vmem>>, %arg8: memref<1xf32, #tpu.memory_space<smem>>, %arg9: memref<1x32x128xf32, #tpu.memory_space<vmem>>) attributes {dimension_semantics = [#tpu.dimension_semantics<parallel>, #tpu.dimension_semantics<parallel>], iteration_bounds = array<i64: 2, 2>, scalar_prefetch = 0 : i64, scratch_operands = 0 : i64, tpu.core_type = #tpu.core_type<tc>, window_params = [{transform_indices = @transform_0, window_bounds = array<i64: 1, 32, 128>}, {transform_indices = @transform_1, window_bounds = array<i64: 1, 32, 256>}, {pipeline_mode = #tpu.pipeline_mode<synchronous>, transform_indices = @transform_2, window_bounds = array<i64: 32, 32>}, {pipeline_mode = #tpu.pipeline_mode<synchronous>, transform_indices = @transform_3, window_bounds = array<i64: 1, 32>}, {pipeline_mode = #tpu.pipeline_mode<synchronous>, transform_indices = @transform_4, window_bounds = array<i64: 32, 32>}, {pipeline_mode = #tpu.pipeline_mode<synchronous>, transform_indices = @transform_5, window_bounds = array<i64: 32, 1>}, {transform_indices = @transform_6, window_bounds = array<i64: 1>}, {transform_indices = @transform_7, window_bounds = array<i64: 1, 32, 128>}]} {
    %c0 = arith.constant 0 : index
    %c0_0 = arith.constant 0 : index
    %c0_1 = arith.constant 0 : index
    %0 = vector.load %arg2[%c0, %c0_0, %c0_1] : memref<1x32x128xf32, #tpu.memory_space<vmem>>, vector<1x32x128xf32>
    %1 = vector.shape_cast %0 : vector<1x32x128xf32> to vector<32x128xf32>
    %c0_2 = arith.constant 0 : index
    %c0_3 = arith.constant 0 : index
    %c0_4 = arith.constant 0 : index
    %2 = vector.load %arg3[%c0_2, %c0_3, %c0_4] : memref<1x32x256xf32, #tpu.memory_space<vmem>>, vector<1x32x256xf32>
    %3 = vector.shape_cast %2 : vector<1x32x256xf32> to vector<32x256xf32>
    %c0_5 = arith.constant 0 : index
    %c0_6 = arith.constant 0 : index
    %4 = vector.load %arg4[%c0_5, %c0_6] : memref<32x32xf32, #tpu.memory_space<vmem>>, vector<32x32xf32>
    %c0_7 = arith.constant 0 : index
    %c0_8 = arith.constant 0 : index
    %5 = vector.load %arg5[%c0_7, %c0_8] : memref<1x32xf32, #tpu.memory_space<vmem>>, vector<1x32xf32>
    %c0_9 = arith.constant 0 : index
    %c0_10 = arith.constant 0 : index
    %6 = vector.load %arg6[%c0_9, %c0_10] : memref<32x32xf32, #tpu.memory_space<vmem>>, vector<32x32xf32>
    %cst = arith.constant dense<0.000000e+00> : vector<32x256xf32>
    %7 = tpu.matmul %4, %3, %cst {dimension_numbers = #tpu.dot_dimension_numbers<[1], [0], [0], [1], [0, 0, 1, 1], [], []>} : vector<32x32xf32>, vector<32x256xf32>, vector<32x256xf32> -> vector<32x256xf32>
    %cst_11 = arith.constant dense<0.000000e+00> : vector<128x256xf32>
    %8 = tpu.matmul %1, %7, %cst_11 {dimension_numbers = #tpu.dot_dimension_numbers<[0], [0], [1], [1], [0, 1, 1, 1], [], []>} : vector<32x128xf32>, vector<32x256xf32>, vector<128x256xf32> -> vector<128x256xf32>
    %cst_12 = arith.constant dense<0.000000e+00> : vector<1x256xf32>
    %9 = tpu.matmul %5, %3, %cst_12 {dimension_numbers = #tpu.dot_dimension_numbers<[1], [0], [0], [1], [0, 0, 1, 1], [], []>} : vector<1x32xf32>, vector<32x256xf32>, vector<1x256xf32> -> vector<1x256xf32>
    %10 = vector.broadcast %9 : vector<1x256xf32> to vector<128x256xf32>
    %11 = arith.addf %8, %10 : vector<128x256xf32>
    %cst_13 = arith.constant dense<0xFF800000> : vector<128xf32>
    %12 = vector.multi_reduction <maximumf>, %11, %cst_13 [1] : vector<128x256xf32> to vector<128xf32>
    %13 = vector.shape_cast %12 : vector<128xf32> to vector<128x1xf32>
    %14 = vector.broadcast %13 : vector<128x1xf32> to vector<128x256xf32>
    %15 = arith.subf %11, %14 : vector<128x256xf32>
    %16 = math.exp %15 : vector<128x256xf32>
    %cst_14 = arith.constant dense<0.000000e+00> : vector<128xf32>
    %17 = vector.multi_reduction <add>, %16, %cst_14 [1] : vector<128x256xf32> to vector<128xf32>
    %18 = vector.shape_cast %17 : vector<128xf32> to vector<128x1xf32>
    %19 = tpu.reciprocal %18 {approx = true} : vector<128x1xf32> -> vector<128x1xf32>
    %20 = vector.broadcast %19 : vector<128x1xf32> to vector<128x256xf32>
    %21 = arith.mulf %16, %20 : vector<128x256xf32>
    %cst_15 = arith.constant dense<0.000000e+00> : vector<32x256xf32>
    %22 = tpu.matmul %6, %3, %cst_15 {dimension_numbers = #tpu.dot_dimension_numbers<[0], [0], [1], [1], [0, 1, 1, 1], [], []>} : vector<32x32xf32>, vector<32x256xf32>, vector<32x256xf32> -> vector<32x256xf32>
    %c0_16 = arith.constant 0 : index
    %c0_17 = arith.constant 0 : index
    %23 = vector.load %arg7[%c0_16, %c0_17] : memref<32x1xf32, #tpu.memory_space<vmem>>, vector<32x1xf32>
    %24 = vector.broadcast %23 : vector<32x1xf32> to vector<32x256xf32>
    %25 = arith.addf %22, %24 : vector<32x256xf32>
    %cst_18 = arith.constant dense<0.000000e+00> : vector<32x128xf32>
    %26 = tpu.matmul %25, %21, %cst_18 {dimension_numbers = #tpu.dot_dimension_numbers<[1], [1], [0], [0], [0, 0, 1, 0], [], []>} : vector<32x256xf32>, vector<128x256xf32>, vector<32x128xf32> -> vector<32x128xf32>
    %c0_19 = arith.constant 0 : index
    %27 = memref.load %arg8[%c0_19] : memref<1xf32, #tpu.memory_space<smem>>
    %28 = vector.broadcast %27 : f32 to vector<32x128xf32>
    %29 = arith.mulf %28, %26 : vector<32x128xf32>
    %30 = arith.addf %29, %1 : vector<32x128xf32>
    %c0_20 = arith.constant 0 : index
    %c0_21 = arith.constant 0 : index
    %c0_22 = arith.constant 0 : index
    %31 = vector.load %arg9[%c0_20, %c0_21, %c0_22] : memref<1x32x128xf32, #tpu.memory_space<vmem>>, vector<1x32x128xf32>
    %32 = vector.shape_cast %31 : vector<1x32x128xf32> to vector<32x128xf32>
    %33 = vector.shape_cast %30 : vector<32x128xf32> to vector<1x32x128xf32>
    tpu.vector_store %arg9[%c0_20, %c0_21, %c0_22], %33 {strides = array<i32>} : memref<1x32x128xf32, #tpu.memory_space<vmem>>, vector<1x32x128xf32>,
    return
  }
  func.func @transform_0(%arg0: i32, %arg1: i32) -> (i32, i32, i32) {
    %c0_i32 = arith.constant 0 : i32
    %c0_i32_0 = arith.constant 0 : i32
    return %arg0, %c0_i32, %arg1 : i32, i32, i32
  }
  func.func @transform_1(%arg0: i32, %arg1: i32) -> (i32, i32, i32) {
    %c0_i32 = arith.constant 0 : i32
    %c0_i32_0 = arith.constant 0 : i32
    %c0_i32_1 = arith.constant 0 : i32
    return %arg0, %c0_i32, %c0_i32_0 : i32, i32, i32
  }
  func.func @transform_2(%arg0: i32, %arg1: i32) -> (i32, i32) {
    %c0_i32 = arith.constant 0 : i32
    %c0_i32_0 = arith.constant 0 : i32
    %c0_i32_1 = arith.constant 0 : i32
    return %c0_i32, %c0_i32_0 : i32, i32
  }
  func.func @transform_3(%arg0: i32, %arg1: i32) -> (i32, i32) {
    %c0_i32 = arith.constant 0 : i32
    %c0_i32_0 = arith.constant 0 : i32
    %c0_i32_1 = arith.constant 0 : i32
    return %c0_i32, %c0_i32_0 : i32, i32
  }
  func.func @transform_4(%arg0: i32, %arg1: i32) -> (i32, i32) {
    %c0_i32 = arith.constant 0 : i32
    %c0_i32_0 = arith.constant 0 : i32
    %c0_i32_1 = arith.constant 0 : i32
    return %c0_i32, %c0_i32_0 : i32, i32
  }
  func.func @transform_5(%arg0: i32, %arg1: i32) -> (i32, i32) {
    %c0_i32 = arith.constant 0 : i32
    %c0_i32_0 = arith.constant 0 : i32
    %c0_i32_1 = arith.constant 0 : i32
    return %c0_i32, %c0_i32_0 : i32, i32
  }
  func.func @transform_6(%arg0: i32, %arg1: i32) -> i32 {
    %c0_i32 = arith.constant 0 : i32
    %c0_i32_0 = arith.constant 0 : i32
    return %c0_i32 : i32
  }
  func.func @transform_7(%arg0: i32, %arg1: i32) -> (i32, i32, i32) {
    %c0_i32 = arith.constant 0 : i32
    %c0_i32_0 = arith.constant 0 : i32
    return %arg0, %c0_i32, %arg1 : i32, i32, i32
  }
}

</mosaic_0001>

<bundles_post_ra>
// kernel: tpu_custom_call.1
= control target key start
LH: loop header
LB: loop body
LE: loop exit
PB: predicated region body
PF: predicated region fallthrough
CT: control target
= control target key end

     0   :  { %s2524_s0 = inlined_call_operand.hbm [shape: f32[2,32,256], index: 0, kind: input, shape index: {}]   ;;  %s2525_s1 = inlined_call_operand.hbm [shape: f32[2,32,256], index: 1, kind: input, shape index: {}]   ;;  %s2526_s2 = inlined_call_operand.vmem [shape: f32[32,32], index: 2, kind: input, shape index: {}]   ;;  %s2527_s3 = inlined_call_operand.vmem [shape: f32[1,32], index: 3, kind: input, shape index: {}]   ;;  %s2528_s4 = inlined_call_operand.hbm [shape: f32[32,32], index: 4, kind: input, shape index: {}]   ;;  %s2529_s5 = inlined_call_operand.vmem [shape: f32[32,1], index: 5, kind: input, shape index: {}]   ;;  %s2530_s6 = inlined_call_operand.<no memory space> [shape: f32[1], index: 6, kind: input, shape index: {}]   ;;  %s2531_s7 = inlined_call_operand.hbm [shape: f32[2,32,256], index: 7, kind: output, shape index: {}]  }
   0x1   :  { %2544 = sst [smem:[#allocation24_spill]] %s2524_s0 }
   0x2   :  { %2545 = sst [smem:[#allocation25_spill]] %s2528_s4 }
   0x3   :  { %2546 = sst [smem:[#allocation26_spill]] %s2529_s5 }
   0x4   :  { %2547 = sst [smem:[#allocation27_spill]] %s2531_s7 }
   0x5   :  { %12 = sst [smem:[#allocation2]] %s2530_s6 }
   0x6   :  { %13 = vsyncpa [#allocation4], 0 }
   0x7   :  { %15 = vsyncpa [#allocation4 + $0x1], 0 }
   0x8   :  { %16 = vsyncpa [#allocation7], 0 }
   0x9   :  { %18 = vsyncpa [#allocation7 + $0x1], 0 }
   0xa   :  { %19 = vsyncpa [#allocation5], 0 }
   0xb   :  { %21 = vsyncpa [#allocation5 + $0x1], 0  ;;  %s1873_s26 = smov 0   ;;  %s1875_s27 = smov 0  }
   0xc   :  { %s1877_s28 = smov 0   ;;  %s1879_s29 = smov 0  }
   0xd   :  { %s1881_s30 = smov 0   ;;  %s1883_s8 = smov 0  }
   0xe   :  { %s1885_s9 = smov 0   ;;  %s1887_s6 = smov 0  }
   0xf   :  { %s1889_s10 = smov 0   ;;  %s1891_s11 = smov 0  }
  0x10   :  { %s1893_s12 = smov 0  }
  0x11 LB: > { %2548 = sst [smem:[#allocation14_spill]] %s1791_s29  ;;  %s1927_s13 = sadd.s32 4294967295, %s1819_s12   ;;  %s1819_s12 = sphi %s1893_s12, %s27_s12   ;;  %s1815_s11 = sphi %s1891_s11, %s2587_s11   ;;  %s1811_s10 = sphi %s1889_s10, %s2579_s10   ;;  %s1807_s6 = sphi %s1887_s6, %s2586_s6   ;;  %s1803_s9 = sphi %s1885_s9, %s2578_s9   ;;  %s1799_s8 = sphi %s1883_s8, %s2577_s8   ;;  %s1795_s30 = sphi %s1881_s30, %s2585_s30   ;;  %s1791_s29 = sphi %s1879_s29, %s2584_s29   ;;  %s1787_s28 = sphi %s1877_s28, %s2583_s28   ;;  %s1783_s27 = sphi %s1875_s27, %s2582_s27   ;;  %s1779_s26 = sphi %s1873_s26, %s2581_s26  }
  0x12   : > { %2549 = sst [smem:[#allocation15_spill]] %s1799_s8  ;;  %s1298_s14 = sadd.s32 4294967294, %s1819_s12  }
  0x13   : > { %2550 = sst [smem:[#allocation16_spill]] %s1803_s9  ;;  %p61_p0 = scmp.ne.s32.totalorder %s1795_s30, %s1791_s29 }
  0x14   : > { %2551 = sst [smem:[#allocation17_spill]] %s1807_s6  ;;  %p62_p1 = scmp.eq.s32.totalorder %s1927_s13, 0 }
  0x15   : > { %2552 = sst [smem:[#allocation18_spill]] %s1811_s10  ;;  %p87_p2 = scmp.ne.s32.totalorder %s1783_s27, %s1779_s26 }
  0x16   : > { %p218_p3 = scmp.eq.s32.totalorder %s1927_s13, 3  ;;  %p1937_p4 = por %p62_p1, %p61_p0 }
  0x17   : > { %p224_p5 = scmp.eq.s32.totalorder %s1298_s14, 3  ;;  %p1943_p6 = por %p87_p2, %p62_p1 }
  0x18   : > { %p1299_p7 = scmp.ge.s32.totalorder %s1819_s12, 1  ;;  %p231_p9 = scmp.lt.s32.totalorder %s1819_s12, 5 }
  0x19   : > { %p1948_p8 = por %p224_p5, %p61_p0  ;;  %s2557_s4 = sld [smem:[#allocation25_spill]] }
  0x1a   : > { %p1956_p10 = pnand %p1299_p7, %p231_p9  ;;  %s1821_s22 = smov [#allocation8]  }
  0x1b   : > { %s2555_s17 = scalar_select %p1948_p8, 1, 0 }
  0x1c   : > { %p1379_p11 = pneg %p1956_p10  ;;  %s250_s23 = sshll.u32 %s1821_s22, 4  ;;  %s251_s23 = int_to_ptr.vmem [resolvable:$true] %s250_s23 }
  0x1d   : > { %2556 = sst [smem:[#allocation19_spill]] %s2555_s17  ;;  %s2532_s24 = smov 128  }
  0x1e   : > { %p1380_p12 = pnand %p1379_p11, %p62_p1  ;;  %s2533_s25 = smov 8  }
  0x1f   : > { %s248_s20 = sshll.u32 %s2557_s4, 4  ;;  %s36_s26 = sadd.s32 1, %s1811_s10  ;;  %s249_s20 = int_to_ptr.hbm [resolvable:$true] %s248_s20 }
  0x20   : > { %1382 = dma.hbm_to_vmem [thread:$0]  (!%p1380_p12), %s249_s20, 512, %s251_s23, [#allocation7], %s2532_s24, %s2532_s24, %s2533_s25  }
  0x21   : > { %p37_p13 = scmp.ge.s32.totalorder %s36_s26, 2  ;;  %s39_s14 = sadd.s32 1, %s1815_s11 }
  0x22   : > { %s48_s18 = sadd.s32 1, %s1799_s8  ;;  %p55_p0 = scmp.ne.s32.totalorder %s1799_s8, %s1795_s30 }
  0x23   : > { %s2589_s26 = smov (%p37_p13, %s36_s26), 0  ;;  %s2591_s14 = smov (!%p37_p13, %s39_s14), %s1815_s11 }
  0x24   : > { %2559 = sst [smem:[#allocation20_spill]] %s2589_s26  ;;  %s44_s19 = ssub.s32 %s1811_s10, %s2589_s26 }
  0x25   : > { %p56_p2 = scmp.eq.s32.totalorder %s1819_s12, 0  ;;  %p41_p5 = scmp.ge.s32.totalorder %s2591_s14, 2 }
  0x26   : > { %p1980_p7 = por %p218_p3, %p55_p0  ;;  %p1395_p11 = scmp.lt.s32.totalorder %s1819_s12, 4 }
  0x27   : > { %p1986_p9 = por %p56_p2, %p55_p0  ;;  %s2593_s14 = smov (%p41_p5, %s2591_s14), 0 }
  0x28   : > { %s2560_s22 = scalar_select %p1980_p7, 1, 0 }
  0x29   : > { %2563 = sst [smem:[#allocation22_spill]] %s2593_s14  ;;  %s270_s23 = sand.u32 1, %s1799_s8  }
  0x2a   : > { %2561 = sst [smem:[#allocation21_spill]] %s2560_s22  ;;  %s1303_s24 = sshll.u32 %s1815_s11, 3 }
  0x2b   : > { %s43_s25 = ssub.s32 %s1815_s11, %s2593_s14  ;;  %s1302_s26 = sshll.u32 %s270_s23, 5 }
  0x2c   : > { %s45_s4 = sor.u32 %s44_s19, %s43_s25  ;;  %p72_p12 = scmp.eq.s32.totalorder %s43_s25, 0 }
  0x2d   : > { %p46_p3 = scmp.eq.s32.totalorder %s45_s4, 0  ;;  %s278_s17 = sadd.s32 %s1811_s10, %s1303_s24 }
  0x2e   : > { %s1304_s22 = sshll.u32 %s278_s17, 3  ;;  %s274_s7 = scalar_lea.vmem [#allocation3], %s1302_s26 }
  0x2f   : > { %s1999_s29 = scalar_select %p46_p3, %s1799_s8, %s48_s18  }
  0x30   : > { %s283_s9 = sshll.u32 %s274_s7, 4  ;;  %s2565_s0 = sld [smem:[#allocation24_spill]]  ;;  %s284_s9 = int_to_ptr.vmem [resolvable:$true] %s283_s9 }
  0x31   : > { %2564 = sst [smem:[#allocation23_spill]] %s1999_s29  ;;  %p1384_p13 = pnand %p1395_p11, %p1986_p9 }
  0x32   : > { %s271_s24 = scalar_lea.sflag [#allocation4], %s270_s23  ;;  %s1824_s10 = smov 256  }
  0x33   : > { %s2566_s18 = smov 8   ;;  %s2567_s29 = smov 128  }
  0x34   : > { %s293_s17 = sand.u32 1, %s1819_s12   ;;  %s74_s26 = sadd.s32 1, %s1787_s28 }
  0x35   : > { %p81_p0 = scmp.ne.s32.totalorder %s1787_s28, %s1783_s27  ;;  %s295_s6 = sand.u32 1, %s1787_s28  }
  0x36   : > { %s280_s19 = scalar_lea.hbm %s2565_s0, %s1304_s22  ;;  %s1368_s14 = sshll.u32 %s1815_s11, 6 }
  0x37   : > { %s281_s4 = sshll.u32 %s280_s19, 4  ;;  %p83_p5 = por %p81_p0, %p56_p2  ;;  %s282_s4 = int_to_ptr.hbm [resolvable:$true] %s281_s4 }
  0x38   : > { %1386 = dma.hbm_to_vmem [thread:$0]  (!%p1384_p13), %s282_s4, 512, %s284_s9, %s271_s24, %s1824_s10, %s2567_s29, %s2566_s18  }
  0x39   : > { %s2016_s7 = scalar_select %p72_p12, %s1787_s28, %s74_s26  }
  0x3a   : > { %s1305_s22 = sshll.u32 %s295_s6, 6  ;;  %s302_s23 = scalar_lea.hbm %s2525_s1, %s1368_s14 }
  0x3b   : > { %s303_s0 = sshll.u32 %s302_s23, 4  ;;  %s297_s8 = scalar_lea.vmem [#allocation6], %s1305_s22  ;;  %s304_s0 = int_to_ptr.hbm [resolvable:$true] %s303_s0 }
  0x3c   : > { %s305_s5 = sshll.u32 %s297_s8, 4  ;;  %p1387_p9 = pnand %p1395_p11, %p83_p5  ;;  %s306_s5 = int_to_ptr.vmem [resolvable:$true] %s305_s5 }
  0x3d   : > { %s294_s29 = scalar_lea.sflag [#allocation7], %s293_s17  ;;  %s1825_s9 = smov 16  }
  0x3e   : > { %1389 = dma.hbm_to_vmem [thread:$0]  (!%p1387_p9), %s304_s0, 1024, %s306_s5, %s294_s29, %s1824_s10, %s1824_s10, %s1825_s9  }
  0x3f   : > { %317 = sbr.rel (%p1956_p10) target bundleno = 1025 (0x401), region = 48  ;;  %s2030_s25 = sand.u32 (!%p1956_p10), 1, %s1795_s30  }
  0x40   : > { %s1309_s4 = sshll.u32 (!%p1956_p10), %s2030_s25, 5  ;;  %s320_s24 = scalar_lea.sflag (!%p1956_p10), [#allocation4], %s2030_s25 }
  0x41   : > { %s2036_s8 = scalar_lea.vmem (!%p1956_p10), [#allocation3], %s1309_s4 }
  0x44   : > { %1762 = dma.done.wait (%p1937_p4), %s320_s24, 512  }
  0x45   : > { %1764 = vsyncadd (%p1937_p4), %s320_s24, 4294966784  ;;  %s329_s0 = sand.u32 1, %s1927_s13   ;;  %s331_s5 = sand.u32 1, %s1783_s27  }
  0x46   : > { %s1310_s10 = sshll.u32 %s331_s5, 6  ;;  %s330_s21 = scalar_lea.sflag [#allocation7], %s329_s0 }
  0x47   : > { %s333_s18 = scalar_lea.vmem [#allocation6], %s1310_s10 }
  0x48   : > { %1766 = dma.done.wait (%p1943_p6), %s330_s21, 1024  }
  0x49   : > { %1768 = vsyncadd (%p1943_p6), %s330_s21, 4294966272 }
  0x4a   : > { %1770 = dma.done.wait (%p62_p1), [#allocation7], 512  }
  0x4b   : > { %1772 = vsyncadd (%p62_p1), [#allocation7], 4294966784  ;;  %v385_v0 = vld [vmem:[%s333_s18 + $0x30] sm:$0xff]  ;;  %v386_v1 = vld [vmem:[%s333_s18 + $0x38] sm:$0xff]  ;;  %vm396_vm0 = vcmask 261120   ;;  %s2568_s9 = sld [smem:[#allocation26_spill]] }
  0x4c   : > { %v375_v2 = vld [vmem:[%s2036_s8] sm:$0xff]  ;;  %421 = vmatpush.msra.mxu0 %v385_v0  ;;  %450 = vmatpush.msra.mxu1 %v386_v1  ;;  %v384_v4 = vld [vmem:[%s333_s18 + $0x28] sm:$0xff]  ;;  %v381_v5 = vld [vmem:[%s333_s18 + $0x10] sm:$0xff]  ;;  %s1146_s15 = sld [smem:[#allocation2]]  ;;  %s374_s26 = scalar_lea.vmem [#allocation9], %s1309_s4 }
  0x4d   : > { %v383_v3 = vld [vmem:[%s333_s18 + $0x20] sm:$0xff]  ;;  %512 = vxpose.xlu0.b32.start [1/4] (short) %v375_v2, 128  ;;  %v382_v6 = vld [vmem:[%s333_s18 + $0x18] sm:$0xff]  ;;  %482 = vmatpush.msra.mxu2 %v385_v0  ;;  %v380_v8 = vld [vmem:[%s333_s18 + $0x8] sm:$0xff]  ;;  %s2570_s16 = sld [smem:[#allocation17_spill]]  ;;  %s1174_s29 = sshll.u32 %s374_s26, 4  ;;  %s1175_s29 = int_to_ptr.vmem [resolvable:$true] %s1174_s29 }
  0x4e   : > { %422 = vmatpush.msra.mxu0 %v383_v3  ;;  %451 = vmatpush.msra.mxu1 %v384_v4  ;;  %v379_v7 = vld [vmem:[%s333_s18] sm:$0xff]  ;;  %v376_v10 = vld [vmem:[%s2036_s8 + $0x8] sm:$0xff]  ;;  %v377_v12 = vld [vmem:[%s2036_s8 + $0x10] sm:$0xff]  ;;  %s2571_s17 = sld [smem:[#allocation16_spill]]  ;;  %s1161_s5 = scalar_lea.sflag [#allocation5], %s2030_s25 }
  0x4f   : > { %502 = vmatpush.msra.mxu3 %v386_v1  ;;  %483 = vmatpush.msra.mxu2 %v383_v3  ;;  %v387_v9 = vld [vmem:[%s2526_s2] sm:$0xff]  ;;  %v388_v11 = vld [vmem:[%s2526_s2 + $0x8] sm:$0xff]  ;;  %v389_v13 = vld [vmem:[%s2526_s2 + $0x10] sm:$0xff]  ;;  %s2572_s19 = sld [smem:[#allocation27_spill]] }
  0x50   : > { %423 = vmatpush.msra.mxu0 %v381_v5  ;;  %452 = vmatpush.msra.mxu1 %v382_v6  ;;  %v378_v14 = vld [vmem:[%s2036_s8 + $0x18] sm:$0xff]  ;;  %v391_v16 = vld [vmem:[%s2527_s3] sm:$0x1] }
  0x51   : > { %503 = vmatpush.msra.mxu3 %v384_v4  ;;  %484 = vmatpush.msra.mxu2 %v381_v5  ;;  %v390_v15 = vld [vmem:[%s2526_s2 + $0x18] sm:$0xff]  ;;  %s2569_s24 = smov %s2568_s9 }
  0x52   : > { %424 = vmatpush.msra.mxu0 %v379_v7  ;;  %453 = vmatpush.msra.mxu1 %v380_v8 }
  0x53   : > { %1313 = vmatmul.msk.f32.vlgmr.msra.gmra.mxu0 %vm396_vm0, %v387_v9  ;;  %1317 = vmatmul.msk.f32.vlgmr.msra.gmra.mxu1 %vm396_vm0, %v387_v9  ;;  %s1364_s6 = sshll.u32 %s2570_s16, 3 }
  0x54   : > { %504 = vmatpush.msra.mxu3 %v382_v6  ;;  %485 = vmatpush.msra.mxu2 %v379_v7  ;;  %s1171_s14 = sadd.s32 %s2571_s17, %s1364_s6 }
  0x55   : > { %513 = vxpose.xlu0.b32.cont [2/4] (short) %v376_v10, 128  ;;  %1042 = vmatpush.msrb.mxu0 %v385_v0  ;;  %s1365_s22 = sshll.u32 %s1171_s14, 3 }
  0x56   : > { %505 = vmatpush.msra.mxu3 %v380_v8  ;;  %1071 = vmatpush.msrb.mxu1 %v386_v1  ;;  %s1173_s23 = scalar_lea.hbm %s2572_s19, %s1365_s22 }
  0x57   : > { %1043 = vmatpush.msrb.mxu0 %v383_v3  ;;  %1321 = vmatmul.msk.f32.vlgmr.msra.gmra.mxu2 %vm396_vm0, %v391_v16  ;;  %s1176_s0 = sshll.u32 %s1173_s23, 4  ;;  %s1177_s0 = int_to_ptr.hbm [resolvable:$true] %s1176_s0 }
  0x58   : > { %1072 = vmatpush.msrb.mxu1 %v384_v4  ;;  %1322 = vmatmul.msk.f32.vlgmr.msra.gmra.mxu3 %vm396_vm0, %v391_v16  ;;  %s1703_s10 = sshra.s32 %s1177_s0, 4  ;;  %s1704_s10 = int_to_ptr.hbm [resolvable:$true] %s1703_s10 }
  0x59   : > { %1044 = vmatpush.msrb.mxu0 %v381_v5  ;;  %s1705_s21 = scalar_lea.hbm %s1704_s10, 32  ;;  %p1710_p10 = scmp.lt.s32.totalorder %s1704_s10, %s2572_s19 }
  0x5a   : > { %1073 = vmatpush.msrb.mxu1 %v382_v6  ;;  %p1706_p1 = scmp.ne.s32.totalorder %s1704_s10, %s1705_s21 }
  0x5b   : > { %1314 = vmatmul.msk.f32.gmra.mxu0 %vm396_vm0, %v388_v11  ;;  %1318 = vmatmul.msk.f32.gmra.mxu1 %vm396_vm0, %v388_v11 }
  0x5c   : > { %1045 = vmatpush.msrb.mxu0 %v379_v7  ;;  %1074 = vmatpush.msrb.mxu1 %v380_v8  ;;  %p1707_p4 = pnand %p1706_p1, %p1980_p7 }
  0x5d   : > { %514 = vxpose.xlu0.b32.cont [3/4] (short) %v377_v12, 128 }
  0x5e   : > { %p1708_p6 = pneg %p1707_p4 }
  0x63   : > { %1315 = vmatmul.msk.f32.gmra.mxu0 %vm396_vm0, %v389_v13  ;;  %1319 = vmatmul.msk.f32.gmra.mxu1 %vm396_vm0, %v389_v13 }
  0x65   : > { %515 = vxpose.xlu0.b32.end [4/4] (short) %v378_v14, 128 }
  0x6b   : > { %1316 = vmatmul.msk.f32.gmra.mxu0 %vm396_vm0, %v390_v15  ;;  %1320 = vmatmul.msk.f32.gmra.mxu1 %vm396_vm0, %v390_v15 }
  0xd0   : > { %v426_v17 = vpop.f32.mrf.mxu0  ;;  %v455_v18 = vpop.f32.mrf.mxu1 }
  0xd8   : > { %v429_v19 = vpop.f32.mrf.mxu0  ;;  %v458_v20 = vpop.f32.mrf.mxu1 }
  0xda   : > { %v487_v41 = vpop.f32.mrf.mxu2 }
  0xdb   : > { %v507_v42 = vpop.f32.mrf.mxu3  ;;  %v2137_v59 = vperm.slane %v487_v41, 0 }
  0xdc   : > { %v2139_v60 = vperm.slane %v507_v42, 0 }
  0xe0   : > { %v432_v21 = vpop.f32.mrf.mxu0  ;;  %v461_v22 = vpop.f32.mrf.mxu1 }
  0xe8   : > { %v435_v23 = vpop.f32.mrf.mxu0  ;;  %v464_v24 = vpop.f32.mrf.mxu1 }
  0xe9   : > { %604 = vmatpush.msrb.mxu2 %v435_v23  ;;  %669 = vmatpush.msrb.mxu3 %v464_v24 }
  0xeb   : > { %605 = vmatpush.msrb.mxu2 %v432_v21  ;;  %670 = vmatpush.msrb.mxu3 %v461_v22 }
  0xed   : > { %606 = vmatpush.msrb.mxu2 %v429_v19  ;;  %671 = vmatpush.msrb.mxu3 %v458_v20 }
  0xef   : > { %607 = vmatpush.msrb.mxu2 %v426_v17  ;;  %672 = vmatpush.msrb.mxu3 %v455_v18 }
  0xf1   : > { %v528_v25 = vpop.trf.xlu0 }
  0xf2   : > { %1323 = vmatmul.msk.f32.vlgmr.msrb.gmra.mxu2 %vm396_vm0, %v528_v25  ;;  %1339 = vmatmul.msk.f32.vlgmr.msrb.gmra.mxu3 %vm396_vm0, %v528_v25 }
  0xf9   : > { %v529_v26 = vpop.trf.xlu0 }
  0xfa   : > { %1324 = vmatmul.msk.f32.gmra.mxu2 %vm396_vm0, %v529_v26  ;;  %1340 = vmatmul.msk.f32.gmra.mxu3 %vm396_vm0, %v529_v26 }
 0x101   : > { %v530_v27 = vpop.trf.xlu0 }
 0x102   : > { %1325 = vmatmul.msk.f32.gmra.mxu2 %vm396_vm0, %v530_v27  ;;  %1341 = vmatmul.msk.f32.gmra.mxu3 %vm396_vm0, %v530_v27 }
 0x109   : > { %v531_v28 = vpop.trf.xlu0 }
 0x10a   : > { %1326 = vmatmul.msk.f32.gmra.mxu2 %vm396_vm0, %v531_v28  ;;  %1342 = vmatmul.msk.f32.gmra.mxu3 %vm396_vm0, %v531_v28 }
 0x111   : > { %v532_v29 = vpop.trf.xlu0 }
 0x112   : > { %1327 = vmatmul.msk.f32.gmra.mxu2 %vm396_vm0, %v532_v29  ;;  %1343 = vmatmul.msk.f32.gmra.mxu3 %vm396_vm0, %v532_v29 }
 0x119   : > { %v533_v30 = vpop.trf.xlu0 }
 0x11a   : > { %1328 = vmatmul.msk.f32.gmra.mxu2 %vm396_vm0, %v533_v30  ;;  %1344 = vmatmul.msk.f32.gmra.mxu3 %vm396_vm0, %v533_v30 }
 0x121   : > { %v534_v31 = vpop.trf.xlu0 }
 0x122   : > { %1329 = vmatmul.msk.f32.gmra.mxu2 %vm396_vm0, %v534_v31  ;;  %1345 = vmatmul.msk.f32.gmra.mxu3 %vm396_vm0, %v534_v31 }
 0x129   : > { %v535_v32 = vpop.trf.xlu0 }
 0x12a   : > { %1330 = vmatmul.msk.f32.gmra.mxu2 %vm396_vm0, %v535_v32  ;;  %1346 = vmatmul.msk.f32.gmra.mxu3 %vm396_vm0, %v535_v32 }
 0x131   : > { %v536_v33 = vpop.trf.xlu0 }
 0x132   : > { %1331 = vmatmul.msk.f32.gmra.mxu2 %vm396_vm0, %v536_v33  ;;  %1347 = vmatmul.msk.f32.gmra.mxu3 %vm396_vm0, %v536_v33 }
 0x139   : > { %v537_v34 = vpop.trf.xlu0 }
 0x13a   : > { %1332 = vmatmul.msk.f32.gmra.mxu2 %vm396_vm0, %v537_v34  ;;  %1348 = vmatmul.msk.f32.gmra.mxu3 %vm396_vm0, %v537_v34 }
 0x141   : > { %v538_v35 = vpop.trf.xlu0 }
 0x142   : > { %1333 = vmatmul.msk.f32.gmra.mxu2 %vm396_vm0, %v538_v35  ;;  %1349 = vmatmul.msk.f32.gmra.mxu3 %vm396_vm0, %v538_v35 }
 0x149   : > { %v539_v36 = vpop.trf.xlu0 }
 0x14a   : > { %1334 = vmatmul.msk.f32.gmra.mxu2 %vm396_vm0, %v539_v36  ;;  %1350 = vmatmul.msk.f32.gmra.mxu3 %vm396_vm0, %v539_v36 }
 0x151   : > { %v540_v37 = vpop.trf.xlu0 }
 0x152   : > { %1335 = vmatmul.msk.f32.gmra.mxu2 %vm396_vm0, %v540_v37  ;;  %1351 = vmatmul.msk.f32.gmra.mxu3 %vm396_vm0, %v540_v37 }
 0x159   : > { %v541_v38 = vpop.trf.xlu0 }
 0x15a   : > { %1336 = vmatmul.msk.f32.gmra.mxu2 %vm396_vm0, %v541_v38  ;;  %1352 = vmatmul.msk.f32.gmra.mxu3 %vm396_vm0, %v541_v38 }
 0x161   : > { %v542_v39 = vpop.trf.xlu0 }
 0x162   : > { %1337 = vmatmul.msk.f32.gmra.mxu2 %vm396_vm0, %v542_v39  ;;  %1353 = vmatmul.msk.f32.gmra.mxu3 %vm396_vm0, %v542_v39 }
 0x169   : > { %v543_v40 = vpop.trf.xlu0 }
 0x16a   : > { %1338 = vmatmul.msk.f32.gmra.mxu2 %vm396_vm0, %v543_v40  ;;  %1354 = vmatmul.msk.f32.gmra.mxu3 %vm396_vm0, %v543_v40 }
 0x175   : > { %v2113_v43 = vpop.f32.mrf.mxu2  ;;  %v2115_v44 = vpop.f32.mrf.mxu3 }
 0x17d   : > { %v2117_v45 = vpop.f32.mrf.mxu2  ;;  %v2119_v46 = vpop.f32.mrf.mxu3 }
 0x185   : > { %v2121_v47 = vpop.f32.mrf.mxu2  ;;  %v2123_v48 = vpop.f32.mrf.mxu3 }
 0x18d   : > { %v2125_v49 = vpop.f32.mrf.mxu2  ;;  %v2127_v50 = vpop.f32.mrf.mxu3 }
 0x195   : > { %v2129_v51 = vpop.f32.mrf.mxu2  ;;  %v2131_v52 = vpop.f32.mrf.mxu3 }
 0x19d   : > { %v2133_v53 = vpop.f32.mrf.mxu2  ;;  %v2135_v54 = vpop.f32.mrf.mxu3 }
 0x1a5   : > { %v627_v55 = vpop.f32.mrf.mxu2  ;;  %v692_v56 = vpop.f32.mrf.mxu3 }
 0x1a6   : > { %v2214_v40 = vadd.f32 %v627_v55, %v2137_v59  ;;  %v2217_v41 = vadd.f32 %v692_v56, %v2139_v60  ;;  %v2233_v55 = vadd.f32 %v2129_v51, %v2137_v59  ;;  %v2237_v56 = vadd.f32 %v2131_v52, %v2139_v60 }
 0x1a7   : > { %v2253_v52 = vadd.f32 %v2121_v47, %v2137_v59 }
 0x1a8   : > { %v740_v42 = vmax.f32 %v2214_v40, %v2217_v41 }
 0x1ad   : > { %v630_v57 = vpop.f32.mrf.mxu2  ;;  %v695_v58 = vpop.f32.mrf.mxu3 }
 0x1ae   : > { %v2198_v32 = vadd.f32 %v630_v57, %v2137_v59  ;;  %v2201_v33 = vadd.f32 %v695_v58, %v2139_v60  ;;  %v2223_v57 = vadd.f32 %v2133_v53, %v2137_v59  ;;  %v2227_v58 = vadd.f32 %v2135_v54, %v2139_v60 }
 0x1af   : > { %v734_v53 = vmax.f32 %v2233_v55, %v2237_v56  ;;  %v2243_v54 = vadd.f32 %v2125_v49, %v2137_v59 }
 0x1b0   : > { %v743_v38 = vmax.f32 %v2198_v32, %v2201_v33 }
 0x1b5   : > { %v633_v61 = vpop.f32.mrf.mxu2  ;;  %v698_v62 = vpop.f32.mrf.mxu3 }
 0x1b6   : > { %v2142_v63 = vadd.f32 %v633_v61, %v2137_v59  ;;  %v2145_v0 = vadd.f32 %v698_v62, %v2139_v60  ;;  %v737_v61 = vmax.f32 %v2223_v57, %v2227_v58  ;;  %v2247_v62 = vadd.f32 %v2127_v50, %v2139_v60 }
 0x1b7   : > { %v2263_v50 = vadd.f32 %v2117_v45, %v2137_v59 }
 0x1b8   : > { %v746_v1 = vmax.f32 %v2142_v63, %v2145_v0  ;;  %v731_v51 = vmax.f32 %v2243_v54, %v2247_v62 }
 0x1ba   : > { %747 = vmax.xlane.f32.xlu0 %v746_v1  ;;  %v2257_v1 = vadd.f32 %v2123_v48, %v2139_v60  ;;  %v2273_v48 = vadd.f32 %v2113_v43, %v2137_v59 }
 0x1bc   : > { %v728_v49 = vmax.f32 %v2253_v52, %v2257_v1 }
 0x1bd   : > { %v636_v2 = vpop.f32.mrf.mxu2  ;;  %v701_v3 = vpop.f32.mrf.mxu3 }
 0x1be   : > { %v2182_v24 = vadd.f32 %v636_v2, %v2137_v59  ;;  %v2185_v25 = vadd.f32 %v701_v3, %v2139_v60  ;;  %v2267_v2 = vadd.f32 %v2119_v46, %v2139_v60  ;;  %v2277_v3 = vadd.f32 %v2115_v44, %v2139_v60  ;;  %v393_v46 = vld [vmem:[#allocation8 + $0x8] sm:$0xff] }
 0x1c0   : > { %v749_v30 = vmax.f32 %v2182_v24, %v2185_v25  ;;  %v725_v47 = vmax.f32 %v2263_v50, %v2267_v2  ;;  %v722_v45 = vmax.f32 %v2273_v48, %v2277_v3 }
 0x1c5   : > { %v639_v4 = vpop.f32.mrf.mxu2  ;;  %v704_v5 = vpop.f32.mrf.mxu3 }
 0x1c6   : > { %v2150_v6 = vadd.f32 %v639_v4, %v2137_v59  ;;  %v2153_v7 = vadd.f32 %v704_v5, %v2139_v60  ;;  %v392_v4 = vld [vmem:[#allocation8] sm:$0xff]  ;;  %v394_v5 = vld [vmem:[#allocation8 + $0x10] sm:$0xff] }
 0x1c8   : > { %v752_v8 = vmax.f32 %v2150_v6, %v2153_v7 }
 0x1ca   : > { %753 = vmax.xlane.f32.xlu2 %v752_v8  ;;  %v395_v8 = vld [vmem:[#allocation8 + $0x18] sm:$0xff] }
 0x1cd   : > { %v642_v9 = vpop.f32.mrf.mxu2  ;;  %v707_v10 = vpop.f32.mrf.mxu3 }
 0x1ce   : > { %v2158_v11 = vadd.f32 %v642_v9, %v2137_v59  ;;  %v2161_v12 = vadd.f32 %v707_v10, %v2139_v60 }
 0x1d0   : > { %v755_v13 = vmax.f32 %v2158_v11, %v2161_v12 }
 0x1d2   : > { %756 = vmax.xlane.f32.xlu1 %v755_v13 }
 0x1d5   : > { %v645_v14 = vpop.f32.mrf.mxu2  ;;  %v710_v15 = vpop.f32.mrf.mxu3 }
 0x1d6   : > { %v2166_v16 = vadd.f32 %v645_v14, %v2137_v59  ;;  %v2169_v17 = vadd.f32 %v710_v15, %v2139_v60 }
 0x1d8   : > { %v758_v18 = vmax.f32 %v2166_v16, %v2169_v17 }
 0x1da   : > { %759 = vmax.xlane.f32.xlu2 %v758_v18 }
 0x1dd   : > { %v648_v19 = vpop.f32.mrf.mxu2  ;;  %v713_v20 = vpop.f32.mrf.mxu3 }
 0x1de   : > { %v2174_v21 = vadd.f32 %v648_v19, %v2137_v59  ;;  %v2177_v22 = vadd.f32 %v713_v20, %v2139_v60 }
 0x1e0   : > { %v761_v23 = vmax.f32 %v2174_v21, %v2177_v22 }
 0x1e2   : > { %762 = vmax.xlane.f32.xlu2 %v761_v23 }
 0x1e5   : > { %v651_v26 = vpop.f32.mrf.mxu2  ;;  %v716_v27 = vpop.f32.mrf.mxu3 }
 0x1e6   : > { %v2188_v28 = vadd.f32 %v651_v26, %v2137_v59  ;;  %v2191_v29 = vadd.f32 %v716_v27, %v2139_v60 }
 0x1e8   : > { %v764_v31 = vmax.f32 %v2188_v28, %v2191_v29 }
 0x1ea   : > { %750 = vmax.xlane.f32.xlu2 %v749_v30  ;;  %765 = vmax.xlane.f32.xlu1 %v764_v31 }
 0x1ed   : > { %v654_v34 = vpop.f32.mrf.mxu2  ;;  %v719_v35 = vpop.f32.mrf.mxu3 }
 0x1ee   : > { %v2204_v36 = vadd.f32 %v654_v34, %v2137_v59  ;;  %v2207_v37 = vadd.f32 %v719_v35, %v2139_v60 }
 0x1f0   : > { %v767_v39 = vmax.f32 %v2204_v36, %v2207_v37 }
 0x1f2   : > { %744 = vmax.xlane.f32.xlu2 %v743_v38  ;;  %768 = vmax.xlane.f32.xlu1 %v767_v39 }
 0x1fa   : > { %741 = vmax.xlane.f32.xlu2 %v740_v42 }
 0x202   : > { %738 = vmax.xlane.f32.xlu2 %v737_v61 }
 0x20a   : > { %735 = vmax.xlane.f32.xlu2 %v734_v53 }
 0x212   : > { %732 = vmax.xlane.f32.xlu2 %v731_v51 }
 0x21a   : > { %729 = vmax.xlane.f32.xlu2 %v728_v49 }
 0x222   : > { %726 = vmax.xlane.f32.xlu2 %v725_v47 }
 0x22a   : > { %723 = vmax.xlane.f32.xlu2 %v722_v45 }
 0x22c   : > { %986 = vxpose.xlu1.b32.start [1/4] (short) (narrow) %v392_v4, 32 }
 0x22d   : > { %v748_v39 = vpop.xlane.xlu0 %747 }
 0x22e   : > { %v786_v49 = vsub.f32 %v2142_v63, %v748_v39 }
 0x230   : > { %v834_v47 = vmul.f32 1.442695, %v786_v49 }
 0x234   : > { %987 = vxpose.xlu1.b32.cont [2/4] (short) (narrow) %v393_v46, 32 }
 0x23c   : > { %988 = vxpose.xlu1.b32.cont [3/4] (short) (narrow) %v394_v5, 32 }
 0x23d   : > { %v754_v9 = vpop.xlane.xlu2 %753 }
 0x23e   : > { %v790_v26 = vsub.f32 %v2150_v6, %v754_v9 }
 0x244   : > { %989 = vxpose.xlu1.b32.end [4/4] (short) (narrow) %v395_v8, 32 }
 0x245   : > { %v757_v10 = vpop.xlane.xlu1 %756 }
 0x246   : > { %v792_v60 = vsub.f32 %v2158_v11, %v757_v10  ;;  %v793_v15 = vsub.f32 %v2161_v12, %v757_v10  ;;  %v842_v12 = vmul.f32 1.442695, %v790_v26 }
 0x248   : > { %v846_v18 = vmul.f32 1.442695, %v792_v60  ;;  %v848_v19 = vmul.f32 1.442695, %v793_v15 }
 0x24d   : > { %v760_v43 = vpop.xlane.xlu2 %759 }
 0x24e   : > { %v794_v59 = vsub.f32 %v2166_v16, %v760_v43  ;;  %v795_v44 = vsub.f32 %v2169_v17, %v760_v43  ;;  %v791_v17 = vsub.f32 %v2153_v7, %v754_v9 }
 0x250   : > { %v850_v13 = vmul.f32 1.442695, %v794_v59  ;;  %v852_v14 = vmul.f32 1.442695, %v795_v44  ;;  %v844_v27 = vmul.f32 1.442695, %v791_v17 }
 0x252   : > { %1499 = vpow2.f32 %v850_v13 }
 0x253   : > { %1501 = vpow2.f32 %v852_v14 }
 0x254   : > { %1503 = vpow2.f32 %v846_v18 }
 0x255   : > { %v2285_v20 = vpop.xlane.xlu2 %762  ;;  %1505 = vpow2.f32 %v848_v19 }
 0x256   : > { %1507 = vpow2.f32 %v842_v12  ;;  %v796_v49 = vsub.f32 %v2174_v21, %v2285_v20 }
 0x257   : > { %1509 = vpow2.f32 %v844_v27 }
 0x258   : > { %v2287_v23 = vpop.eup %1499 }
 0x259   : > { %v2290_v16 = vpop.eup %1501 }
 0x25a   : > { %v902_v11 = vadd.f32 %v2290_v16, %v2287_v23  ;;  %v2295_v31 = vpop.eup %1503 }
 0x25b   : > { %v2297_v34 = vpop.eup %1505 }
 0x25c   : > { %903 = vadd.xlane.f32.xlu2 %v902_v11  ;;  %v899_v7 = vadd.f32 %v2297_v34, %v2295_v31  ;;  %v2303_v53 = vpop.eup %1507 }
 0x25d   : > { %v751_v30 = vpop.xlane.xlu2 %750  ;;  %v2305_v51 = vpop.eup %1509 }
 0x25e   : > { %v788_v6 = vsub.f32 %v2182_v24, %v751_v30  ;;  %v789_v35 = vsub.f32 %v2185_v25, %v751_v30  ;;  %v787_v24 = vsub.f32 %v2145_v0, %v748_v39  ;;  %v896_v25 = vadd.f32 %v2305_v51, %v2303_v53  ;;  %v766_v17 = vpop.xlane.xlu1 %765 }
 0x260   : > { %v838_v38 = vmul.f32 1.442695, %v788_v6  ;;  %v840_v42 = vmul.f32 1.442695, %v789_v35  ;;  %v836_v45 = vmul.f32 1.442695, %v787_v24  ;;  %v798_v35 = vsub.f32 %v2188_v28, %v766_v17 }
 0x261   : > { %v797_v28 = vsub.f32 %v2177_v22, %v2285_v20 }
 0x262   : > { %1511 = vpow2.f32 %v838_v38 }
 0x263   : > { %1513 = vpow2.f32 %v840_v42 }
 0x264   : > { %900 = vadd.xlane.f32.xlu2 %v899_v7  ;;  %1515 = vpow2.f32 %v834_v47  ;;  %v858_v7 = vmul.f32 1.442695, %v798_v35  ;;  %v854_v47 = vmul.f32 1.442695, %v796_v49 }
 0x265   : > { %v745_v61 = vpop.xlane.xlu2 %744  ;;  %1517 = vpow2.f32 %v836_v45 }
 0x266   : > { %v784_v8 = vsub.f32 %v2198_v32, %v745_v61  ;;  %v785_v63 = vsub.f32 %v2201_v33, %v745_v61  ;;  %v769_v39 = vpop.xlane.xlu1 %768 }
 0x268   : > { %v2311_v46 = vpop.eup %1511  ;;  %v830_v9 = vmul.f32 1.442695, %v784_v8  ;;  %v832_v10 = vmul.f32 1.442695, %v785_v63 }
 0x269   : > { %v2313_v5 = vpop.eup %1513 }
 0x26a   : > { %v893_v0 = vadd.f32 %v2313_v5, %v2311_v46  ;;  %v2319_v59 = vpop.eup %1515  ;;  %1519 = vpow2.f32 %v830_v9 }
 0x26b   : > { %v2321_v44 = vpop.eup %1517  ;;  %1521 = vpow2.f32 %v832_v10 }
 0x26c   : > { %897 = vadd.xlane.f32.xlu2 %v896_v25  ;;  %v890_v33 = vadd.f32 %v2321_v44, %v2319_v59  ;;  %v801_v25 = vsub.f32 %v2207_v37, %v769_v39 }
 0x26d   : > { %v742_v4 = vpop.xlane.xlu2 %741 }
 0x26e   : > { %v782_v60 = vsub.f32 %v2214_v40, %v742_v4  ;;  %v783_v32 = vsub.f32 %v2217_v41, %v742_v4  ;;  %v856_v4 = vmul.f32 1.442695, %v797_v28  ;;  %v864_v63 = vmul.f32 1.442695, %v801_v25 }
 0x270   : > { %v826_v13 = vmul.f32 1.442695, %v782_v60  ;;  %v828_v14 = vmul.f32 1.442695, %v783_v32  ;;  %v2327_v18 = vpop.eup %1519 }
 0x271   : > { %v2329_v19 = vpop.eup %1521 }
 0x272   : > { %1523 = vpow2.f32 %v826_v13  ;;  %v887_v41 = vadd.f32 %v2329_v19, %v2327_v18 }
 0x273   : > { %1525 = vpow2.f32 %v828_v14 }
 0x274   : > { %894 = vadd.xlane.f32.xlu2 %v893_v0 }
 0x275   : > { %v739_v43 = vpop.xlane.xlu2 %738 }
 0x276   : > { %v780_v26 = vsub.f32 %v2223_v57, %v739_v43  ;;  %v781_v40 = vsub.f32 %v2227_v58, %v739_v43  ;;  %v799_v57 = vsub.f32 %v2191_v29, %v766_v17  ;;  %v800_v29 = vsub.f32 %v2204_v36, %v769_v39 }
 0x278   : > { %v822_v11 = vmul.f32 1.442695, %v780_v26  ;;  %v824_v12 = vmul.f32 1.442695, %v781_v40  ;;  %v2335_v30 = vpop.eup %1523  ;;  %v860_v38 = vmul.f32 1.442695, %v799_v57 }
 0x279   : > { %v2337_v6 = vpop.eup %1525  ;;  %v862_v8 = vmul.f32 1.442695, %v800_v29 }
 0x27a   : > { %1527 = vpow2.f32 %v822_v11  ;;  %v884_v58 = vadd.f32 %v2337_v6, %v2335_v30 }
 0x27b   : > { %1529 = vpow2.f32 %v824_v12 }
 0x27c   : > { %891 = vadd.xlane.f32.xlu2 %v890_v33  ;;  %1531 = vpow2.f32 %v858_v7 }
 0x27d   : > { %v736_v15 = vpop.xlane.xlu2 %735  ;;  %1533 = vpow2.f32 %v860_v38 }
 0x27e   : > { %1535 = vpow2.f32 %v854_v47  ;;  %v778_v22 = vsub.f32 %v2233_v55, %v736_v15  ;;  %v779_v36 = vsub.f32 %v2237_v56, %v736_v15 }
 0x27f   : > { %1537 = vpow2.f32 %v856_v4 }
 0x280   : > { %v2343_v61 = vpop.eup %1527  ;;  %1539 = vpow2.f32 %v862_v8  ;;  %v818_v10 = vmul.f32 1.442695, %v778_v22  ;;  %v820_v60 = vmul.f32 1.442695, %v779_v36  ;;  %v1826_v8 = vmov 0   ;;  %v965_v36 = vld [vmem:[%s2569_s24 + $0x18] sm:$0xff] }
 0x281   : > { %v2347_v24 = vpop.eup %1529  ;;  %1541 = vpow2.f32 %v864_v63  ;;  %v963_v63 = vld [vmem:[%s2568_s9 + $0x8] sm:$0xff]  ;;  %1496 = vset.pattern.permute.xlu2 %v1826_v8  ;;  %1498 = vset.pattern.permute.xlu0 %v1826_v8 }
 0x282   : > { %v881_v45 = vadd.f32 %v2347_v24, %v2343_v61  ;;  %v2355_v0 = vpop.eup %1531  ;;  %1543 = vpow2.f32 %v818_v10 }
 0x283   : > { %v2357_v9 = vpop.eup %1533  ;;  %1545 = vpow2.f32 %v820_v60  ;;  %v962_v60 = vld [vmem:[%s2569_s24] sm:$0xff] }
 0x284   : > { %888 = vadd.xlane.f32.xlu2 %v887_v41  ;;  %v908_v37 = vadd.f32 %v2357_v9, %v2355_v0  ;;  %v2363_v20 = vpop.eup %1535 }
 0x285   : > { %v733_v27 = vpop.xlane.xlu2 %732  ;;  %v2365_v43 = vpop.eup %1537 }
 0x286   : > { %v2367_v33 = vpop.eup %1539  ;;  %v776_v56 = vsub.f32 %v2243_v54, %v733_v27  ;;  %v777_v40 = vsub.f32 %v2247_v62, %v733_v27  ;;  %v905_v17 = vadd.f32 %v2365_v43, %v2363_v20 }
 0x287   : > { %v2371_v14 = vpop.eup %1541 }
 0x288   : > { %v911_v41 = vadd.f32 %v2371_v14, %v2367_v33  ;;  %v2379_v11 = vpop.eup %1543 }
 0x289   : > { %v2381_v54 = vpop.eup %1545 }
 0x28a   : > { %v878_v57 = vadd.f32 %v2381_v54, %v2379_v11 }
 0x28c   : > { %885 = vadd.xlane.f32.xlu2 %v884_v58 }
 0x28d   : > { %v730_v42 = vpop.xlane.xlu2 %729 }
 0x28e   : > { %v774_v62 = vsub.f32 %v2253_v52, %v730_v42  ;;  %v775_v35 = vsub.f32 %v2257_v1, %v730_v42 }
 0x290   : > { %v810_v7 = vmul.f32 1.442695, %v774_v62  ;;  %v812_v38 = vmul.f32 1.442695, %v775_v35 }
 0x294   : > { %882 = vadd.xlane.f32.xlu2 %v881_v45 }
 0x295   : > { %v727_v21 = vpop.xlane.xlu2 %726 }
 0x296   : > { %v772_v52 = vsub.f32 %v2263_v50, %v727_v21  ;;  %v773_v1 = vsub.f32 %v2267_v2, %v727_v21 }
 0x297   : > { %1497 = vset.pattern.permute.xlu1 %v1826_v8 }
 0x298   : > { %v806_v28 = vmul.f32 1.442695, %v772_v52  ;;  %v808_v29 = vmul.f32 1.442695, %v773_v1 }
 0x29c   : > { %909 = vadd.xlane.f32.xlu2 %v908_v37 }
 0x29d   : > { %v724_v32 = vpop.xlane.xlu2 %723 }
 0x29e   : > { %v770_v13 = vsub.f32 %v2273_v48, %v724_v32  ;;  %v771_v55 = vsub.f32 %v2277_v3, %v724_v32  ;;  %v814_v48 = vmul.f32 1.442695, %v776_v56  ;;  %v816_v3 = vmul.f32 1.442695, %v777_v40 }
 0x2a0   : > { %v802_v15 = vmul.f32 1.442695, %v770_v13  ;;  %v804_v26 = vmul.f32 1.442695, %v771_v55  ;;  %v964_v55 = vld [vmem:[%s2569_s24 + $0x10] sm:$0xff] }
 0x2a2   : > { %1547 = vpow2.f32 %v802_v15 }
 0x2a3   : > { %1549 = vpow2.f32 %v804_v26 }
 0x2a4   : > { %912 = vadd.xlane.f32.xlu2 %v911_v41  ;;  %906 = vadd.xlane.f32.xlu1 %v905_v17  ;;  %1551 = vpow2.f32 %v814_v48 }
 0x2a5   : > { %1553 = vpow2.f32 %v816_v3 }
 0x2a6   : > { %1555 = vpow2.f32 %v810_v7 }
 0x2a7   : > { %1557 = vpow2.f32 %v812_v38 }
 0x2a8   : > { %v2383_v12 = vpop.eup %1547  ;;  %1559 = vpow2.f32 %v806_v28 }
 0x2a9   : > { %v2386_v27 = vpop.eup %1549  ;;  %1561 = vpow2.f32 %v808_v29 }
 0x2aa   : > { %v866_v58 = vadd.f32 %v2386_v27, %v2383_v12  ;;  %v2393_v39 = vpop.eup %1551 }
 0x2ab   : > { %v2395_v49 = vpop.eup %1553 }
 0x2ac   : > { %879 = vadd.xlane.f32.xlu2 %v878_v57  ;;  %867 = vadd.xlane.f32.xlu1 %v866_v58  ;;  %v875_v42 = vadd.f32 %v2395_v49, %v2393_v39  ;;  %v2401_v25 = vpop.eup %1555 }
 0x2ad   : > { %v2403_v47 = vpop.eup %1557 }
 0x2ae   : > { %v872_v45 = vadd.f32 %v2403_v47, %v2401_v25  ;;  %v2407_v50 = vpop.eup %1559 }
 0x2af   : > { %v2409_v4 = vpop.eup %1561 }
 0x2b0   : > { %v869_v2 = vadd.f32 %v2409_v4, %v2407_v50 }
 0x2b4   : > { %876 = vadd.xlane.f32.xlu2 %v875_v42 }
 0x2bc   : > { %873 = vadd.xlane.f32.xlu2 %v872_v45 }
 0x2c4   : > { %870 = vadd.xlane.f32.xlu2 %v869_v2 }
 0x2c5   : > { %973 = vperm.xlu1 %1497, %v963_v63  }
 0x2cd   : > { %983 = vperm.xlu1 %1497, %v965_v36  }
 0x2cf   : > { %v904_v21 = vpop.xlane.xlu2 %903 }
 0x2d0   : > { %v1002_v22 = vpop.trf.xlu1 }
 0x2d1   : > { %1355 = vmatmul.msk.f32.vlgmr.msrb.gmra.mxu0 %vm396_vm0, %v1002_v22  ;;  %1359 = vmatmul.msk.f32.vlgmr.msrb.gmra.mxu1 %vm396_vm0, %v1002_v22 }
 0x2d7   : > { %v901_v37 = vpop.xlane.xlu2 %900 }
 0x2d8   : > { %v1003_v10 = vpop.trf.xlu1 }
 0x2d9   : > { %1356 = vmatmul.msk.f32.gmra.mxu0 %vm396_vm0, %v1003_v10  ;;  %1360 = vmatmul.msk.f32.gmra.mxu1 %vm396_vm0, %v1003_v10 }
 0x2dc   : > { %968 = vperm.xlu2 %1496, %v962_v60  }
 0x2df   : > { %v898_v32 = vpop.xlane.xlu2 %897 }
 0x2e0   : > { %v1004_v13 = vpop.trf.xlu1 }
 0x2e1   : > { %1357 = vmatmul.msk.f32.gmra.mxu0 %vm396_vm0, %v1004_v13  ;;  %1361 = vmatmul.msk.f32.gmra.mxu1 %vm396_vm0, %v1004_v13 }
 0x2e4   : > { %978 = vperm.xlu2 %1496, %v964_v55  }
 0x2e7   : > { %v895_v56 = vpop.xlane.xlu2 %894 }
 0x2e8   : > { %v1005_v15 = vpop.trf.xlu1 }
 0x2e9   : > { %1358 = vmatmul.msk.f32.gmra.mxu0 %vm396_vm0, %v1005_v15  ;;  %1362 = vmatmul.msk.f32.gmra.mxu1 %vm396_vm0, %v1005_v15 }
 0x2ef   : > { %v892_v26 = vpop.xlane.xlu2 %891 }
 0x2f7   : > { %v889_v40 = vpop.xlane.xlu2 %888 }
 0x2ff   : > { %v886_v41 = vpop.xlane.xlu2 %885 }
 0x307   : > { %v883_v17 = vpop.xlane.xlu2 %882 }
 0x30f   : > { %v910_v48 = vpop.xlane.xlu2 %909 }
 0x317   : > { %v913_v3 = vpop.xlane.xlu2 %912  ;;  %v907_v62 = vpop.xlane.xlu1 %906 }
 0x318   : > { %1563 = vrcp.f32 %v913_v3 }
 0x319   : > { %1565 = vrcp.f32 %v910_v48 }
 0x31a   : > { %1567 = vrcp.f32 %v907_v62 }
 0x31b   : > { %1569 = vrcp.f32 %v904_v21 }
 0x31c   : > { %1571 = vrcp.f32 %v901_v37 }
 0x31d   : > { %1573 = vrcp.f32 %v898_v32 }
 0x31e   : > { %v1564_v35 = vpop.eup %1563  ;;  %1575 = vrcp.f32 %v895_v56 }
 0x31f   : > { %v960_v57 = vmul.f32 %v1564_v35, %v2367_v33  ;;  %v961_v58 = vmul.f32 %v1564_v35, %v2371_v14  ;;  %v1566_v7 = vpop.eup %1565  ;;  %1577 = vrcp.f32 %v892_v26 }
 0x320   : > { %v958_v38 = vmul.f32 %v1566_v7, %v2355_v0  ;;  %v959_v52 = vmul.f32 %v1566_v7, %v2357_v9  ;;  %v1568_v1 = vpop.eup %1567  ;;  %v880_v0 = vpop.xlane.xlu2 %879  ;;  %1579 = vrcp.f32 %v889_v40 }
 0x321   : > { %1088 = vmatpush.xpose.msra.mxu0 %v960_v57  ;;  %1117 = vmatpush.xpose.msra.mxu1 %v961_v58  ;;  %v956_v42 = vmul.f32 %v1568_v1, %v2363_v20  ;;  %v957_v28 = vmul.f32 %v1568_v1, %v2365_v43  ;;  %v1570_v29 = vpop.eup %1569  ;;  %1581 = vrcp.f32 %v886_v41 }
 0x322   : > { %v954_v33 = vmul.f32 %v1570_v29, %v2287_v23  ;;  %v955_v14 = vmul.f32 %v1570_v29, %v2290_v16  ;;  %v1572_v45 = vpop.eup %1571  ;;  %1583 = vrcp.f32 %v883_v17 }
 0x323   : > { %v952_v9 = vmul.f32 %v1572_v45, %v2295_v31  ;;  %v953_v2 = vmul.f32 %v1572_v45, %v2297_v34  ;;  %v1574_v20 = vpop.eup %1573  ;;  %1585 = vrcp.f32 %v880_v0 }
 0x324   : > { %v950_v43 = vmul.f32 %v1574_v20, %v2303_v53  ;;  %v951_v8 = vmul.f32 %v1574_v20, %v2305_v51  ;;  %v1576_v23 = vpop.eup %1575 }
 0x325   : > { %1089 = vmatpush.xpose.msra.mxu0 %v958_v38  ;;  %1118 = vmatpush.xpose.msra.mxu1 %v959_v52  ;;  %v948_v63 = vmul.f32 %v1576_v23, %v2311_v46  ;;  %v949_v21 = vmul.f32 %v1576_v23, %v2313_v5  ;;  %v1578_v31 = vpop.eup %1577 }
 0x326   : > { %v946_v34 = vmul.f32 %v1578_v31, %v2319_v59  ;;  %v947_v22 = vmul.f32 %v1578_v31, %v2321_v44  ;;  %v1580_v53 = vpop.eup %1579 }
 0x327   : > { %v944_v51 = vmul.f32 %v1580_v53, %v2327_v18  ;;  %v945_v36 = vmul.f32 %v1580_v53, %v2329_v19  ;;  %v1582_v37 = vpop.eup %1581  ;;  %v1597_v53 = vld [vmem:[%s2036_s8 + $0x10] sm:$0xff] }
 0x328   : > { %v877_v16 = vpop.xlane.xlu2 %876  ;;  %v942_v5 = vmul.f32 %v1582_v37, %v2335_v30  ;;  %v943_v10 = vmul.f32 %v1582_v37, %v2337_v6  ;;  %v1584_v59 = vpop.eup %1583 }
 0x329   : > { %1090 = vmatpush.xpose.msra.mxu0 %v956_v42  ;;  %1119 = vmatpush.xpose.msra.mxu1 %v957_v28  ;;  %1587 = vrcp.f32 %v877_v16  ;;  %v940_v44 = vmul.f32 %v1584_v59, %v2343_v61  ;;  %v941_v60 = vmul.f32 %v1584_v59, %v2347_v24  ;;  %v1586_v18 = vpop.eup %1585  ;;  %v868_v6 = vpop.xlane.xlu1 %867  ;;  %v1596_v16 = vld [vmem:[%s2036_s8 + $0x8] sm:$0xff] }
 0x32a   : > { %v938_v32 = vmul.f32 %v1586_v18, %v2379_v11  ;;  %v939_v13 = vmul.f32 %v1586_v18, %v2381_v54 }
 0x32d   : > { %1091 = vmatpush.xpose.msra.mxu0 %v954_v33  ;;  %1120 = vmatpush.xpose.msra.mxu1 %v955_v14  ;;  %v1147_v14 = vstv %s1146_s15  ;;  %s1709_s15 = scalar_lea.hbm %s2572_s19, 128 }
 0x32e   : > { %p1711_p2 = scmp.lt.s32.totalorder %s1709_s15, %s1705_s21 }
 0x32f   : > { %v1588_v30 = vpop.eup %1587 }
 0x330   : > { %v874_v46 = vpop.xlane.xlu2 %873  ;;  %v936_v55 = vmul.f32 %v1588_v30, %v2393_v39  ;;  %v937_v61 = vmul.f32 %v1588_v30, %v2395_v49  ;;  %p1712_p11 = por %p1711_p2, %p1710_p10 }
 0x331   : > { %1092 = vmatpush.xpose.msra.mxu0 %v952_v9  ;;  %1121 = vmatpush.xpose.msra.mxu1 %v953_v2  ;;  %1589 = vrcp.f32 %v874_v46  ;;  %v1595_v9 = vld [vmem:[%s2036_s8] sm:$0xff] }
 0x332   : > { %p1713_p12 = pnand %p1712_p11, %p1708_p6 }
 0x335   : > { %1093 = vmatpush.xpose.msra.mxu0 %v950_v43  ;;  %1122 = vmatpush.xpose.msra.mxu1 %v951_v8 }
 0x337   : > { %v1590_v56 = vpop.eup %1589  ;;  %v974_v35 = vpop.permute.xlu1 %973 }
 0x338   : > { %v871_v19 = vpop.xlane.xlu2 %870  ;;  %v934_v24 = vmul.f32 %v1590_v56, %v2401_v25  ;;  %v935_v15 = vmul.f32 %v1590_v56, %v2403_v47 }
 0x339   : > { %1094 = vmatpush.xpose.msra.mxu0 %v948_v63  ;;  %1123 = vmatpush.xpose.msra.mxu1 %v949_v21  ;;  %1591 = vrcp.f32 %v871_v19 }
 0x33a   : > { %1593 = vrcp.f32 %v868_v6 }
 0x33d   : > { %1095 = vmatpush.xpose.msra.mxu0 %v946_v34  ;;  %1124 = vmatpush.xpose.msra.mxu1 %v947_v22 }
 0x33f   : > { %v1592_v11 = vpop.eup %1591  ;;  %v984_v1 = vpop.permute.xlu1 %983 }
 0x340   : > { %v932_v40 = vmul.f32 %v1592_v11, %v2407_v50  ;;  %v933_v41 = vmul.f32 %v1592_v11, %v2409_v4  ;;  %v1594_v39 = vpop.eup %1593  ;;  %v969_v49 = vpop.permute.xlu2 %968 }
 0x341   : > { %1096 = vmatpush.xpose.msra.mxu0 %v944_v51  ;;  %1125 = vmatpush.xpose.msra.mxu1 %v945_v36  ;;  %v930_v17 = vmul.f32 %v1594_v39, %v2383_v12  ;;  %v931_v48 = vmul.f32 %v1594_v39, %v2386_v27 }
 0x345   : > { %1097 = vmatpush.xpose.msra.mxu0 %v942_v5  ;;  %1126 = vmatpush.xpose.msra.mxu1 %v943_v10  ;;  %v1598_v10 = vld [vmem:[%s2036_s8 + $0x18] sm:$0xff] }
 0x348   : > { %v979_v7 = vpop.permute.xlu2 %978 }
 0x349   : > { %1098 = vmatpush.xpose.msra.mxu0 %v940_v44  ;;  %1127 = vmatpush.xpose.msra.mxu1 %v941_v60 }
 0x34d   : > { %1099 = vmatpush.xpose.msra.mxu0 %v938_v32  ;;  %1128 = vmatpush.xpose.msra.mxu1 %v939_v13 }
 0x34e   : > { %v1047_v26 = vpop.f32.mrf.mxu0  ;;  %v1076_v54 = vpop.f32.mrf.mxu1 }
 0x34f   : > { %v1048_v25 = vadd.f32 %v1047_v26, %v969_v49  ;;  %v1077_v3 = vadd.f32 %v1076_v54, %v969_v49 }
 0x351   : > { %1100 = vmatpush.xpose.msra.mxu0 %v936_v55  ;;  %1129 = vmatpush.xpose.msra.mxu1 %v937_v61 }
 0x355   : > { %1101 = vmatpush.xpose.msra.mxu0 %v934_v24  ;;  %1130 = vmatpush.xpose.msra.mxu1 %v935_v15 }
 0x356   : > { %v1050_v47 = vpop.f32.mrf.mxu0  ;;  %v1079_v62 = vpop.f32.mrf.mxu1 }
 0x357   : > { %v1051_v50 = vadd.f32 %v1050_v47, %v974_v35  ;;  %v1080_v57 = vadd.f32 %v1079_v62, %v974_v35 }
 0x359   : > { %1102 = vmatpush.xpose.msra.mxu0 %v932_v40  ;;  %1131 = vmatpush.xpose.msra.mxu1 %v933_v41 }
 0x35d   : > { %1103 = vmatpush.xpose.msra.mxu0 %v930_v17  ;;  %1132 = vmatpush.xpose.msra.mxu1 %v931_v48 }
 0x35e   : > { %v1053_v4 = vpop.f32.mrf.mxu0  ;;  %v1082_v58 = vpop.f32.mrf.mxu1 }
 0x35f   : > { %v1054_v38 = vadd.f32 %v1053_v4, %v979_v7  ;;  %v1083_v12 = vadd.f32 %v1082_v58, %v979_v7 }
 0x360   : > { %1104 = vmatmul.f32.vlgmr.msra.gmra.mxu0 %v1048_v25  ;;  %1133 = vmatmul.f32.vlgmr.msra.gmra.mxu1 %v1077_v3 }
 0x366   : > { %v1056_v27 = vpop.f32.mrf.mxu0  ;;  %v1085_v52 = vpop.f32.mrf.mxu1 }
 0x367   : > { %v1057_v42 = vadd.f32 %v1056_v27, %v984_v1  ;;  %v1086_v28 = vadd.f32 %v1085_v52, %v984_v1 }
 0x368   : > { %1107 = vmatmul.f32.gmra.mxu0 %v1051_v50  ;;  %1136 = vmatmul.f32.gmra.mxu1 %v1080_v57 }
 0x370   : > { %1110 = vmatmul.f32.gmra.mxu0 %v1054_v38  ;;  %1139 = vmatmul.f32.gmra.mxu1 %v1083_v12 }
 0x378   : > { %1113 = vmatmul.f32.gmra.mxu0 %v1057_v42  ;;  %1142 = vmatmul.f32.gmra.mxu1 %v1086_v28 }
 0x3dd   : > { %v1105_v29 = vpop.f32.mrf.mxu0  ;;  %v1134_v33 = vpop.f32.mrf.mxu1 }
 0x3de   : > { %v1135_v45 = vadd.f32 %v1134_v33, %v1105_v29 }
 0x3e0   : > { %v1148_v0 = vmul.f32 %v1147_v14, %v1135_v45 }
 0x3e2   : > { %v1152_v2 = vadd.f32 %v1595_v9, %v1148_v0 }
 0x3e4   : > { %1156 = vst [vmem:[%s374_s26] sm:$0xff] %v1152_v2 }
 0x3e5   : > { %v1108_v20 = vpop.f32.mrf.mxu0  ;;  %v1137_v43 = vpop.f32.mrf.mxu1 }
 0x3e6   : > { %v1138_v8 = vadd.f32 %v1137_v43, %v1108_v20 }
 0x3e8   : > { %v1149_v23 = vmul.f32 %v1147_v14, %v1138_v8 }
 0x3ea   : > { %v1153_v63 = vadd.f32 %v1596_v16, %v1149_v23 }
 0x3ec   : > { %1157 = vst [vmem:[%s374_s26 + $0x8] sm:$0xff] %v1153_v63 }
 0x3ed   : > { %v1111_v21 = vpop.f32.mrf.mxu0  ;;  %v1140_v31 = vpop.f32.mrf.mxu1 }
 0x3ee   : > { %v1141_v34 = vadd.f32 %v1140_v31, %v1111_v21 }
 0x3f0   : > { %v1150_v22 = vmul.f32 %v1147_v14, %v1141_v34 }
 0x3f2   : > { %v1154_v51 = vadd.f32 %v1597_v53, %v1150_v22 }
 0x3f4   : > { %1158 = vst [vmem:[%s374_s26 + $0x10] sm:$0xff] %v1154_v51 }
 0x3f5   : > { %v1114_v36 = vpop.f32.mrf.mxu0  ;;  %v1143_v37 = vpop.f32.mrf.mxu1 }
 0x3f6   : > { %v1144_v46 = vadd.f32 %v1143_v37, %v1114_v36 }
 0x3f8   : > { %v1151_v5 = vmul.f32 %v1147_v14, %v1144_v46 }
 0x3fa   : > { %v1155_v59 = vadd.f32 %v1598_v10, %v1151_v5 }
 0x3fc   : > { %1159 = vst [vmem:[%s374_s26 + $0x18] sm:$0xff] %v1155_v59 }
 0x3fd   : > { %1716 = shalt.err (!%p1713_p12)
}
 0x3fe   : > { %s1827_s25 = smov 128   ;;  %s1828_s8 = smov 256  }
 0x3ff   : > { %s1829_s26 = smov 8  }
 0x400   : > { %1377 = dma.vmem_to_hbm [thread:$0]  (%p1980_p7), %s1175_s29, 512, %s1177_s0, %s1161_s5, %s1827_s25, %s1828_s8, %s1829_s26  }
 0x401 PF: > { %s2574_s6 = sld [smem:[#allocation14_spill]]  ;;  %p1397_p3 = scmp.ge.s32.totalorder %s1819_s12, 2 }
 0x403   : > { %p1391_p13 = pnand %p1397_p3, %p1948_p8 }
 0x405   : > { %p1392_p0 = pneg %p1391_p13 }
 0x407   : > { %s1191_s22 = sand.u32 1, %s2574_s6  }
 0x408   : > { %s1192_s4 = scalar_lea.sflag [#allocation5], %s1191_s22 }
 0x409   : > { %1774 = dma.done.wait (%p1392_p0), %s1192_s4, 512  }
 0x40a   : > { %1776 = vsyncadd (%p1392_p0), %s1192_s4, 4294966784  ;;  %s27_s12 = sadd.s32 1, %s1819_s12   ;;  %s2576_s20 = sld [smem:[#allocation15_spill]] }
 0x40b   : > { %p24_p5 = scmp.ge.s32.totalorder %s27_s12, 6   ;;  %s2577_s8 = sld [smem:[#allocation23_spill]] }
 0x40c   : > { %s2578_s9 = sld [smem:[#allocation18_spill]]  ;;  %s2581_s26 = smov %s1783_s27 }
 0x40d   : > { %s2579_s10 = sld [smem:[#allocation20_spill]]  ;;  %s2582_s27 = smov %s1787_s28 }
 0x40e   : > { %s2580_s23 = sld [smem:[#allocation22_spill]]  ;;  %s2583_s28 = smov %s2016_s7 }
 0x40f   : > { %s2584_s29 = smov %s1795_s30  ;;  %s2586_s6 = smov %s1815_s11 }
 0x410   : > { %s2585_s30 = smov %s2576_s20  ;;  %26 = sbr.rel (!%p24_p5) target bundleno = 17 (0x11), region = 110 }
 0x414   : > { %s2587_s11 = smov %s2580_s23 }
 0x415   :  { %1198 = vsyncpa [#allocation4], 1 }
 0x416   :  { %1200 = vsyncpa [#allocation4 + $0x1], 1 }
 0x417   :  { %1201 = vsyncpa [#allocation7], 1 }
 0x418   :  { %1203 = vsyncpa [#allocation7 + $0x1], 1 }
 0x419   :  { %1204 = vsyncpa [#allocation5], 1 }
 0x41a   :  { %1206 = vsyncpa [#allocation5 + $0x1], 1 }

</bundles_post_ra>
